<compile_context>
chip_gen: v6e
topology: v6e:2x2x1
jax: 0.10.0
libtpu: 0.0.40
codegen_flags: <defaults>
</compile_context>

<pallas_src>
import jax
import jax.numpy as jnp
from jax.experimental import pallas as pl
from jax.experimental.pallas import tpu as pltpu


def _row_sq_sum_kernel(pred_ref, gt_ref, out_ref, acc_ref):
    # pred_ref/gt_ref: (TILE_R, TILE_HW) blocks of the (B*C, H*W) views.
    # out_ref:         (TILE_R, 1) f32 per-row sum of squared diffs.
    # acc_ref:         (TILE_R, TILE_HW) f32 VMEM scratch accumulator.
    s = pl.program_id(1)

    @pl.when(s == 0)
    def _init():
        acc_ref[...] = jnp.zeros_like(acc_ref)

    # For bf16 inputs: subtract in bf16, upcast only for the square.
    diff = (pred_ref[...] - gt_ref[...]).astype(jnp.float32)
    acc_ref[...] += diff * diff  # element-wise accumulate: VPU only, no per-step XLU reduce

    @pl.when(s == pl.num_programs(1) - 1)
    def _finalize():
        out_ref[...] = jnp.sum(acc_ref[...], axis=1, keepdims=True)


def _largest_divisor_tile(total, unit, cap):
    """Largest divisor of `total` that is a multiple of `unit` and <= cap.

    Falls back to `total` (full extent, always a legal block dim) if none.
    """
    best = None
    cap = min(cap, total)
    d = unit
    while d <= cap:
        if total % d == 0:
            best = d
        d += unit
    return best if best is not None else total


def heatmap_mse_loss(output, target, target_weight=(0.25, 1.0)):
    """output, target: (B, C, H, W) arrays (NCHW). Returns scalar float32 loss."""
    B, C, H, W = output.shape
    assert target.shape == output.shape
    HW = H * W
    R = B * C

    if target_weight is None:
        w = jnp.ones((C,), jnp.float32)
    else:
        assert len(target_weight) == C, "target_weight must have one entry per channel"
        w = jnp.asarray(target_weight, dtype=jnp.float32)

    # Free views of the contiguous NCHW buffers -- no HBM transpose.
    pred2 = output.reshape(R, HW)
    gt2 = target.reshape(R, HW)

    itemsize = jnp.dtype(output.dtype).itemsize
    max_block_bytes = 2 * 1024 * 1024      # per-input block; x2 inputs x2 buffers = 8 MiB
    row_unit = 8 if itemsize >= 4 else 16  # bf16 packs 16 rows per sublane tile

    tile_hw = _largest_divisor_tile(HW, 128, 2048)
    max_rows = max(row_unit,
                   (max_block_bytes // (tile_hw * itemsize)) // row_unit * row_unit)
    tile_r = _largest_divisor_tile(R, row_unit, min(256, max_rows))

    grid = (R // tile_r, HW // tile_hw)

    row_sums = pl.pallas_call(
        _row_sq_sum_kernel,
        out_shape=jax.ShapeDtypeStruct((R, 1), jnp.float32),
        grid=grid,
        in_specs=[
            pl.BlockSpec((tile_r, tile_hw), lambda r, s: (r, s)),  # pred tile
            pl.BlockSpec((tile_r, tile_hw), lambda r, s: (r, s)),  # gt tile
        ],
        out_specs=pl.BlockSpec((tile_r, 1), lambda r, s: (r, 0)),  # resident across s
        scratch_shapes=[pltpu.VMEM((tile_r, tile_hw), jnp.float32)],
        compiler_params=pltpu.CompilerParams(
            dimension_semantics=("parallel", "arbitrary"),
        ),
    )(pred2, gt2)

    # Tiny XLA epilogue: weighted combine of per-row partial sums.
    # Row r = b*C + c -> channel weight w[r % C]; all scalars folded here.
    row_scale = jnp.tile(w * w, B) * (0.5 / (B * HW * C))
    return jnp.sum(row_sums[:, 0] * row_scale)


def _reference_loss(output, target, target_weight=(0.25, 1.0)):
    B, C, H, W = output.shape
    pred = output.reshape(B, C, H * W).astype(jnp.float32)
    gt = target.reshape(B, C, H * W).astype(jnp.float32)
    loss = 0.0
    for idx in range(C):
        wc = 1.0 if target_weight is None else target_weight[idx]
        loss += 0.5 * jnp.mean((pred[:, idx, :] * wc - gt[:, idx, :] * wc) ** 2)
    return loss / C


if __name__ == "__main__":
    key = jax.random.PRNGKey(0)
    # (2,2,16,16): single grid step. (2,2,64,64): multi-step spatial reduction.
    for (B, C, H, W) in [(2, 2, 16, 16), (2, 2, 64, 64)]:
        key, k1, k2 = jax.random.split(key, 3)
        output = jax.random.normal(k1, (B, C, H, W), dtype=jnp.float32)
        target = jax.random.normal(k2, (B, C, H, W), dtype=jnp.float32)

        loss = jax.block_until_ready(heatmap_mse_loss(output, target))
        ref = _reference_loss(output, target)
        assert jnp.allclose(loss, ref, rtol=1e-5, atol=1e-6), (B, C, H, W, loss, ref)

    print("KERNEL_OK")
</pallas_src>

<mosaic_0001>
module attributes {stable_mosaic.version = 11 : i64} {
  func.func @_row_sq_sum_kernel(%arg0: i32, %arg1: i32, %arg2: memref<4x256xf32, #tpu.memory_space<vmem>>, %arg3: memref<4x256xf32, #tpu.memory_space<vmem>>, %arg4: memref<4x1xf32, #tpu.memory_space<vmem>>, %arg5: memref<4x256xf32, #tpu.memory_space<vmem>>) attributes {dimension_semantics = [#tpu.dimension_semantics<parallel>, #tpu.dimension_semantics<arbitrary>], iteration_bounds = array<i64: 1, 1>, scalar_prefetch = 0 : i64, scratch_operands = 1 : i64, tpu.core_type = #tpu.core_type<tc>, window_params = [{transform_indices = @transform_0, window_bounds = array<i64: 4, 256>}, {transform_indices = @transform_1, window_bounds = array<i64: 4, 256>}, {transform_indices = @transform_2, window_bounds = array<i64: 4, 1>}]} {
    %c0_i32 = arith.constant 0 : i32
    %0 = arith.cmpi eq, %arg1, %c0_i32 : i32
    %1 = arith.extui %0 : i1 to i32
    %c0_i32_0 = arith.constant 0 : i32
    %2 = arith.cmpi ne, %1, %c0_i32_0 : i32
    scf.if %2 {
      %cst = arith.constant 0.000000e+00 : f32
      %13 = vector.broadcast %cst : f32 to vector<4x256xf32>
      %c0_10 = arith.constant 0 : index
      %c0_11 = arith.constant 0 : index
      %14 = vector.load %arg5[%c0_10, %c0_11] : memref<4x256xf32, #tpu.memory_space<vmem>>, vector<4x256xf32>
      tpu.vector_store %arg5[%c0_10, %c0_11], %13 {strides = array<i32>} : memref<4x256xf32, #tpu.memory_space<vmem>>, vector<4x256xf32>,
    } else {
    }
    %c0 = arith.constant 0 : index
    %c0_1 = arith.constant 0 : index
    %3 = vector.load %arg2[%c0, %c0_1] : memref<4x256xf32, #tpu.memory_space<vmem>>, vector<4x256xf32>
    %c0_2 = arith.constant 0 : index
    %c0_3 = arith.constant 0 : index
    %4 = vector.load %arg3[%c0_2, %c0_3] : memref<4x256xf32, #tpu.memory_space<vmem>>, vector<4x256xf32>
    %5 = arith.subf %3, %4 : vector<4x256xf32>
    %c0_4 = arith.constant 0 : index
    %c0_5 = arith.constant 0 : index
    %6 = vector.load %arg5[%c0_4, %c0_5] : memref<4x256xf32, #tpu.memory_space<vmem>>, vector<4x256xf32>
    %7 = arith.mulf %5, %5 : vector<4x256xf32>
    %8 = arith.addf %6, %7 : vector<4x256xf32>
    %c0_6 = arith.constant 0 : index
    %c0_7 = arith.constant 0 : index
    %9 = vector.load %arg5[%c0_6, %c0_7] : memref<4x256xf32, #tpu.memory_space<vmem>>, vector<4x256xf32>
    tpu.vector_store %arg5[%c0_6, %c0_7], %8 {strides = array<i32>} : memref<4x256xf32, #tpu.memory_space<vmem>>, vector<4x256xf32>,
    %c0_i32_8 = arith.constant 0 : i32
    %10 = arith.cmpi eq, %arg1, %c0_i32_8 : i32
    %11 = arith.extui %10 : i1 to i32
    %c0_i32_9 = arith.constant 0 : i32
    %12 = arith.cmpi ne, %11, %c0_i32_9 : i32
    scf.if %12 {
      %c0_10 = arith.constant 0 : index
      %c0_11 = arith.constant 0 : index
      %13 = vector.load %arg5[%c0_10, %c0_11] : memref<4x256xf32, #tpu.memory_space<vmem>>, vector<4x256xf32>
      %cst = arith.constant dense<0.000000e+00> : vector<4xf32>
      %14 = vector.multi_reduction <add>, %13, %cst [1] : vector<4x256xf32> to vector<4xf32>
      %15 = vector.shape_cast %14 : vector<4xf32> to vector<4x1xf32>
      %c0_12 = arith.constant 0 : index
      %c0_13 = arith.constant 0 : index
      %16 = vector.load %arg4[%c0_12, %c0_13] : memref<4x1xf32, #tpu.memory_space<vmem>>, vector<4x1xf32>
      tpu.vector_store %arg4[%c0_12, %c0_13], %15 {strides = array<i32>} : memref<4x1xf32, #tpu.memory_space<vmem>>, vector<4x1xf32>,
    } else {
    }
    return
  }
  func.func @transform_0(%arg0: i32, %arg1: i32) -> (i32, i32) {
    %c0_i32 = arith.constant 0 : i32
    return %arg0, %arg1 : i32, i32
  }
  func.func @transform_1(%arg0: i32, %arg1: i32) -> (i32, i32) {
    %c0_i32 = arith.constant 0 : i32
    return %arg0, %arg1 : i32, i32
  }
  func.func @transform_2(%arg0: i32, %arg1: i32) -> (i32, i32) {
    %c0_i32 = arith.constant 0 : i32
    %c0_i32_0 = arith.constant 0 : i32
    return %arg0, %c0_i32 : i32, i32
  }
}

</mosaic_0001>

<bundles_post_ra>
// kernel: tpu_custom_call.1
= control target key start
LH: loop header
LB: loop body
LE: loop exit
PB: predicated region body
PF: predicated region fallthrough
CT: control target
= control target key end

     0   :  { %7 = vsyncpa [#allocation4], 0  ;;  %s140_s0 = inlined_call_operand.hbm [shape: f32[4,256], index: 0, kind: input, shape index: {}]   ;;  %s141_s1 = inlined_call_operand.hbm [shape: f32[4,256], index: 1, kind: input, shape index: {}]   ;;  %s142_s2 = inlined_call_operand.vmem [shape: f32[4,1], index: 2, kind: output, shape index: {}]  }
   0x1   :  { %8 = vsyncpa [#allocation6], 0  ;;  %s114_s9 = smov [#allocation3]   ;;  %s115_s11 = smov [#allocation5]  }
   0x2   :  { %s15_s10 = sshll.u32 %s114_s9, 4  ;;  %s25_s12 = sshll.u32 %s115_s11, 4  ;;  %s16_s10 = int_to_ptr.vmem [resolvable:$true] %s15_s10  ;;  %s26_s12 = int_to_ptr.vmem [resolvable:$true] %s25_s12 }
   0x3   :  { %s78_s13 = scalar_lea.vmem %s16_s10, 128  ;;  %p83_p1 = scmp.lt.s32.totalorder %s16_s10, %s16_s10 }
   0x4   :  { %p79_p0 = scmp.ne.s32.totalorder %s16_s10, %s78_s13  ;;  %p84_p2 = scmp.lt.s32.totalorder %s78_s13, %s78_s13 }
   0x6   :  { %p85_p3 = por %p84_p2, %p83_p1 }
   0x8   :  { %p86_p4 = pnand %p85_p3, %p79_p0 }
   0xa   :  { %89 = shalt.err (!%p86_p4)
}
   0xb   :  { %18 = dma.hbm_to_vmem [thread:$0]  %s140_s0, 128, %s16_s10, [#allocation4]  }
   0xc   :  { %s98_s16 = scalar_lea.vmem %s26_s12, 128  ;;  %p103_p6 = scmp.lt.s32.totalorder %s26_s12, %s26_s12 }
   0xd   :  { %p99_p5 = scmp.ne.s32.totalorder %s26_s12, %s98_s16  ;;  %p104_p7 = scmp.lt.s32.totalorder %s98_s16, %s98_s16 }
   0xf   :  { %p105_p8 = por %p104_p7, %p103_p6 }
  0x11   :  { %p106_p9 = pnand %p105_p8, %p99_p5 }
  0x13   :  { %109 = shalt.err (!%p106_p9)
}
  0x14   :  { %28 = dma.hbm_to_vmem [thread:$0]  %s141_s1, 128, %s26_s12, [#allocation6]  }
  0x15   :  { %110 = dma.done.wait [#allocation4], 128  }
  0x16   :  { %111 = vsyncadd [#allocation4], 4294967168 }
  0x17   :  { %112 = dma.done.wait [#allocation6], 128  }
  0x18   :  { %113 = vsyncadd [#allocation6], 4294967168  ;;  %v40_v0 = vld [vmem:[#allocation3] sm:$0xff]  ;;  %v41_v1 = vld [vmem:[#allocation5] sm:$0xff]  ;;  %vm54_vm0 = vcmask 1043456   ;;  %vm60_vm1 = vcmask 3072  }
  0x19   :  { %v42_v2 = vsub.f32 %v40_v0, %v41_v1 }
  0x1b   :  { %v44_v3 = vmul.f32 %v42_v2, %v42_v2 }
  0x1d   :  { %v52_v4 = vcombine.high %v44_v3, %v44_v3  ;;  %v55_v5 = vsel %vm54_vm0, %v44_v3, 0.0 }
  0x1f   :  { %v56_v6 = vsel %vm54_vm0, %v52_v4, 0.0 }
  0x20   :  { %v57_v7 = vadd.f32 %v56_v6, %v55_v5 }
  0x22   :  { %58 = vadd.xlane.f32.xlu0 %v57_v7 }
  0xab   :  { %v59_v8 = vpop.xlane.xlu0 %58 }
  0xac   :  { %61 = vst.msk [vmem:[%s142_s2] sm:$0xf] %vm60_vm1, %v59_v8 }
  0xad   :  { %66 = vsyncpa [#allocation4], 1 }
  0xae   :  { %67 = vsyncpa [#allocation6], 1 }

</bundles_post_ra>
